<compile_context>
chip_gen: v7x
topology: tpu7x:2x2x1
jax: 0.10.0
libtpu: 0.0.40
codegen_flags: <defaults>
</compile_context>

<pallas_src>
import jax
import jax.numpy as jnp
from jax.experimental import pallas as pl
from jax.experimental.pallas import tpu as pltpu

_BN_EPS = 1e-5
_LANE = 128
_SUB = 8


def _round_up(v, m):
    return ((v + m - 1) // m) * m


def _const_spec(shape):
    """BlockSpec for a VMEM-resident parameter block (same block every grid
    step).  Buffered(1) avoids allocating a second (never used) pipeline
    buffer; fall back to the default if this JAX version lacks the kwarg."""
    try:
        return pl.BlockSpec(shape, lambda i: (0, 0), pipeline_mode=pl.Buffered(1))
    except (TypeError, ValueError):
        return pl.BlockSpec(shape, lambda i: (0, 0))


def _make_mlp_kernel(num_hidden, has_out_bn):
    """Kernel closure for `num_hidden` (Linear+BN+ReLU) blocks and a final
    Linear (optionally followed by ReLU + BN when is_logits=False)."""

    def kernel(*refs):
        x_ref = refs[0]
        idx = 1
        # f32 x is read from HBM once; the bf16 cast is an in-register VPU op.
        h = x_ref[...].astype(jnp.bfloat16)
        for _ in range(num_hidden):
            w_ref, s_ref, t_ref = refs[idx], refs[idx + 1], refs[idx + 2]
            idx += 3
            z = jnp.dot(h, w_ref[...], preferred_element_type=jnp.float32)
            z = z * s_ref[...] + t_ref[...]          # Linear bias + BN(eval) fused
            z = jnp.maximum(z, 0.0)                  # ReLU (f32 VPU math)
            h = z.astype(jnp.bfloat16)               # bf16 operand for next MXU pass
        w_ref, b_ref = refs[idx], refs[idx + 1]
        idx += 2
        out = jnp.dot(h, w_ref[...], preferred_element_type=jnp.float32)
        out = out + b_ref[...]
        if has_out_bn:                               # is_logits=False: BN(ReLU(out))
            s_ref, t_ref = refs[idx], refs[idx + 1]
            idx += 2
            out = jnp.maximum(out, 0.0)
            out = out * s_ref[...] + t_ref[...]
        o_ref = refs[idx]
        o_ref[...] = out.astype(o_ref.dtype)

    return kernel


def prepare_params(in_dim, hidden_layers, out_w, out_b, out_bn=None):
    """One-time parameter prep (call once, reuse across forwards).

    hidden_layers: list of (W(in,out), b, bn_gamma, bn_beta, bn_mean, bn_var).
    Returns (operands, meta) for `mlp_forward`.
    """
    ops = []
    shapes = []
    flops_per_row = 0
    d = in_dim
    for (w, b, gamma, beta, mean, var) in hidden_layers:
        dout = w.shape[1]
        s = (gamma / jnp.sqrt(var + _BN_EPS)).astype(jnp.float32)
        t = ((b - mean) * s + beta).astype(jnp.float32)
        ops += [w.astype(jnp.bfloat16), s.reshape(1, -1), t.reshape(1, -1)]
        shapes += [(d, dout), (1, dout), (1, dout)]
        flops_per_row += 2 * d * dout
        d = dout

    C = out_w.shape[1]
    C_pad = _round_up(C, _LANE)                       # lane-dense output stores
    w_out_p = jnp.zeros((d, C_pad), jnp.bfloat16).at[:, :C].set(
        out_w.astype(jnp.bfloat16))
    b_out_p = jnp.zeros((1, C_pad), jnp.float32).at[:, :C].set(
        out_b.reshape(1, -1).astype(jnp.float32))
    ops += [w_out_p, b_out_p]
    shapes += [(d, C_pad), (1, C_pad)]
    flops_per_row += 2 * d * C_pad

    has_out_bn = out_bn is not None
    if has_out_bn:
        gamma, beta, mean, var = out_bn
        s = (gamma / jnp.sqrt(var + _BN_EPS)).astype(jnp.float32)
        t = (beta - mean * s).astype(jnp.float32)
        s_p = jnp.zeros((1, C_pad), jnp.float32).at[:, :C].set(s.reshape(1, -1))
        t_p = jnp.zeros((1, C_pad), jnp.float32).at[:, :C].set(t.reshape(1, -1))
        ops += [s_p, t_p]
        shapes += [(1, C_pad), (1, C_pad)]

    meta = dict(in_dim=in_dim, num_hidden=len(hidden_layers),
                has_out_bn=has_out_bn, out_dim=C, out_dim_padded=C_pad,
                param_shapes=tuple(shapes), flops_per_row=flops_per_row)
    return tuple(ops), meta


def mlp_forward(x, params, meta, *, tile_m=512, out_dtype=jnp.float32):
    """MLP forward: x -> [Linear+BN+ReLU]*n -> Linear (-> ReLU+BN)."""
    if x.ndim > 2:                                   # x.view(x.size(0), -1)
        x = x.reshape(x.shape[0], -1)
    x = x.astype(jnp.float32)
    B, D = x.shape
    assert D == meta["in_dim"]
    C, C_pad = meta["out_dim"], meta["out_dim_padded"]
    out_isz = jnp.dtype(out_dtype).itemsize

    # Batch tile: sublane-aligned, >= 2 grid steps so dimension_semantics
    # ("parallel",) actually shards across v7x's two TensorCores, capped at
    # tile_m rows (big tiles -> HBM-roofline-friendly pipelining).
    TM = min(tile_m, max(_SUB, _round_up(pl.cdiv(B, 2), _SUB)))
    TM = min(TM, _round_up(B, _SUB))

    # VMEM footprint: resident constants (x1, Buffered(1)) + double-buffered x
    # (f32) and output tiles.  Shrink TM if it would exceed a v7x-safe budget.
    const_bytes = sum(int(p.size) * p.dtype.itemsize for p in params)

    def _footprint(tm):
        return const_bytes + 2 * tm * D * 4 + 2 * tm * C_pad * out_isz

    while _footprint(TM) > (48 << 20) and TM > 64:
        TM = max(64, _round_up(TM // 2, _SUB))
    # TODO(synk): if a single weight alone exceeds ~24 MiB, a K-grid axis with
    # an f32 accumulator scratch would be needed instead of holding it resident.

    grid = (pl.cdiv(B, TM),)
    vmem_limit = max(int(_footprint(TM) * 1.25) + (2 << 20), 32 << 20)
    vmem_limit = min(vmem_limit, 100 << 20)

    in_specs = [pl.BlockSpec((TM, D), lambda i: (i, 0))]  # default 2-deep pipeline
    in_specs += [_const_spec(s) for s in meta["param_shapes"]]

    cost = pl.CostEstimate(
        flops=B * meta["flops_per_row"],
        transcendentals=0,
        bytes_accessed=B * D * 4 + B * C_pad * out_isz + const_bytes,
    )

    out = pl.pallas_call(
        _make_mlp_kernel(meta["num_hidden"], meta["has_out_bn"]),
        out_shape=jax.ShapeDtypeStruct((B, C_pad), out_dtype),
        grid=grid,
        in_specs=in_specs,
        out_specs=pl.BlockSpec((TM, C_pad), lambda i: (i, 0)),
        compiler_params=pltpu.CompilerParams(
            dimension_semantics=("parallel",),       # megacore-shardable batch axis
            vmem_limit_bytes=vmem_limit),
        cost_estimate=cost,
    )(x, *params)

    # Slice the lane padding back off (cheap; keep padded output flowing to the
    # consumer if it can accept it).
    return out[:, :C] if C_pad != C else out


def reference_forward(x, hidden_layers, out_w, out_b, out_bn=None):
    """Plain-JAX reference mirroring the kernel math (bf16 dots, f32 accum)."""
    if x.ndim > 2:
        x = x.reshape(x.shape[0], -1)
    h = x.astype(jnp.bfloat16)
    for (w, b, gamma, beta, mean, var) in hidden_layers:
        s = gamma / jnp.sqrt(var + _BN_EPS)
        t = (b - mean) * s + beta
        z = jnp.dot(h, w.astype(jnp.bfloat16), preferred_element_type=jnp.float32)
        z = jnp.maximum(z * s + t, 0.0)
        h = z.astype(jnp.bfloat16)
    out = jnp.dot(h, out_w.astype(jnp.bfloat16),
                  preferred_element_type=jnp.float32) + out_b
    if out_bn is not None:
        gamma, beta, mean, var = out_bn
        s = gamma / jnp.sqrt(var + _BN_EPS)
        out = jnp.maximum(out, 0.0) * s + (beta - mean * s)
    return out


def init_params(key, in_dim, hidden_dims, out_dim, is_logits=True):
    """Deterministic init: PyTorch nn.Linear default uniform(+-1/sqrt(fan_in))
    for W/b (W stored transposed as (in, out)); non-trivial BN eval stats."""
    hidden_layers = []
    d = in_dim
    for hdim in hidden_dims:
        key, kw, kb, kg, kbe, km, kv = jax.random.split(key, 7)
        bound = 1.0 / (d ** 0.5)
        w = jax.random.uniform(kw, (d, hdim), jnp.float32, -bound, bound)
        b = jax.random.uniform(kb, (hdim,), jnp.float32, -bound, bound)
        gamma = jax.random.uniform(kg, (hdim,), jnp.float32, 0.5, 1.5)
        beta = jax.random.uniform(kbe, (hdim,), jnp.float32, -0.5, 0.5)
        mean = 0.2 * jax.random.normal(km, (hdim,), jnp.float32)
        var = jax.random.uniform(kv, (hdim,), jnp.float32, 0.5, 1.5)
        hidden_layers.append((w, b, gamma, beta, mean, var))
        d = hdim
    key, kw, kb = jax.random.split(key, 3)
    bound = 1.0 / (d ** 0.5)
    out_w = jax.random.uniform(kw, (d, out_dim), jnp.float32, -bound, bound)
    out_b = jax.random.uniform(kb, (out_dim,), jnp.float32, -bound, bound)
    out_bn = None
    if not is_logits:
        key, kg, kbe, km, kv = jax.random.split(key, 5)
        out_bn = (
            jax.random.uniform(kg, (out_dim,), jnp.float32, 0.5, 1.5),
            jax.random.uniform(kbe, (out_dim,), jnp.float32, -0.5, 0.5),
            0.2 * jax.random.normal(km, (out_dim,), jnp.float32),
            jax.random.uniform(kv, (out_dim,), jnp.float32, 0.5, 1.5),
        )
    return hidden_layers, out_w, out_b, out_bn


if __name__ == "__main__":
    key = jax.random.PRNGKey(0)
    k_x1, k_x2, k_p1, k_p2 = jax.random.split(key, 4)

    # ---- Case 1: is_logits=True. x (16, 4, 4, 4) flattens to (16, 64). ----
    B1, C_ch, H_sp, W_sp = 16, 4, 4, 4
    in_dim = C_ch * H_sp * W_sp
    hidden_dims = [32, 32]
    out_dim = 8

    x1 = jax.random.normal(k_x1, (B1, C_ch, H_sp, W_sp), jnp.float32)
    hl1, ow1, ob1, obn1 = init_params(k_p1, in_dim, hidden_dims, out_dim,
                                      is_logits=True)
    params1, meta1 = prepare_params(in_dim, hl1, ow1, ob1, obn1)
    out1 = mlp_forward(x1, params1, meta1)
    jax.block_until_ready(out1)
    ref1 = reference_forward(x1, hl1, ow1, ob1, obn1)
    assert out1.shape == (B1, out_dim)
    assert jnp.allclose(out1, ref1, atol=1e-2, rtol=1e-2), \
        float(jnp.max(jnp.abs(out1 - ref1)))

    # ---- Case 2: is_logits=False, ragged batch (B not a multiple of TM). ----
    B2 = 20
    x2 = jax.random.normal(k_x2, (B2, in_dim), jnp.float32)
    hl2, ow2, ob2, obn2 = init_params(k_p2, in_dim, hidden_dims, out_dim,
                                      is_logits=False)
    params2, meta2 = prepare_params(in_dim, hl2, ow2, ob2, obn2)
    out2 = mlp_forward(x2, params2, meta2)
    jax.block_until_ready(out2)
    ref2 = reference_forward(x2, hl2, ow2, ob2, obn2)
    assert out2.shape == (B2, out_dim)
    assert jnp.allclose(out2, ref2, atol=1e-2, rtol=1e-2), \
        float(jnp.max(jnp.abs(out2 - ref2)))

    print("KERNEL_OK")
</pallas_src>

<mosaic_0001>
module attributes {stable_mosaic.version = 11 : i64} {
  func.func @kernel(%arg0: i32, %arg1: memref<8x64xf32, #tpu.memory_space<vmem>>, %arg2: memref<64x32xbf16, #tpu.memory_space<vmem>>, %arg3: memref<1x32xf32, #tpu.memory_space<vmem>>, %arg4: memref<1x32xf32, #tpu.memory_space<vmem>>, %arg5: memref<32x32xbf16, #tpu.memory_space<vmem>>, %arg6: memref<1x32xf32, #tpu.memory_space<vmem>>, %arg7: memref<1x32xf32, #tpu.memory_space<vmem>>, %arg8: memref<32x128xbf16, #tpu.memory_space<vmem>>, %arg9: memref<1x128xf32, #tpu.memory_space<vmem>>, %arg10: memref<8x128xf32, #tpu.memory_space<vmem>>) attributes {dimension_semantics = [#tpu.dimension_semantics<parallel>], iteration_bounds = array<i64: 2>, scalar_prefetch = 0 : i64, scratch_operands = 0 : i64, tpu.core_type = #tpu.core_type<tc>, window_params = [{transform_indices = @transform_0, window_bounds = array<i64: 8, 64>}, {pipeline_mode = #tpu.pipeline_mode<synchronous>, transform_indices = @transform_1, window_bounds = array<i64: 64, 32>}, {pipeline_mode = #tpu.pipeline_mode<synchronous>, transform_indices = @transform_2, window_bounds = array<i64: 1, 32>}, {pipeline_mode = #tpu.pipeline_mode<synchronous>, transform_indices = @transform_3, window_bounds = array<i64: 1, 32>}, {pipeline_mode = #tpu.pipeline_mode<synchronous>, transform_indices = @transform_4, window_bounds = array<i64: 32, 32>}, {pipeline_mode = #tpu.pipeline_mode<synchronous>, transform_indices = @transform_5, window_bounds = array<i64: 1, 32>}, {pipeline_mode = #tpu.pipeline_mode<synchronous>, transform_indices = @transform_6, window_bounds = array<i64: 1, 32>}, {pipeline_mode = #tpu.pipeline_mode<synchronous>, transform_indices = @transform_7, window_bounds = array<i64: 32, 128>}, {pipeline_mode = #tpu.pipeline_mode<synchronous>, transform_indices = @transform_8, window_bounds = array<i64: 1, 128>}, {transform_indices = @transform_9, window_bounds = array<i64: 8, 128>}]} {
    %c0 = arith.constant 0 : index
    %c0_0 = arith.constant 0 : index
    %0 = vector.load %arg1[%c0, %c0_0] : memref<8x64xf32, #tpu.memory_space<vmem>>, vector<8x64xf32>
    %1 = arith.truncf %0 : vector<8x64xf32> to vector<8x64xbf16>
    %c0_1 = arith.constant 0 : index
    %c0_2 = arith.constant 0 : index
    %2 = vector.load %arg2[%c0_1, %c0_2] : memref<64x32xbf16, #tpu.memory_space<vmem>>, vector<64x32xbf16>
    %cst = arith.constant dense<0.000000e+00> : vector<8x32xf32>
    %3 = tpu.matmul %1, %2, %cst {dimension_numbers = #tpu.dot_dimension_numbers<[1], [0], [0], [1], [0, 0, 1, 1], [], []>} : vector<8x64xbf16>, vector<64x32xbf16>, vector<8x32xf32> -> vector<8x32xf32>
    %c0_3 = arith.constant 0 : index
    %c0_4 = arith.constant 0 : index
    %4 = vector.load %arg3[%c0_3, %c0_4] : memref<1x32xf32, #tpu.memory_space<vmem>>, vector<1x32xf32>
    %5 = vector.broadcast %4 : vector<1x32xf32> to vector<8x32xf32>
    %6 = arith.mulf %3, %5 : vector<8x32xf32>
    %c0_5 = arith.constant 0 : index
    %c0_6 = arith.constant 0 : index
    %7 = vector.load %arg4[%c0_5, %c0_6] : memref<1x32xf32, #tpu.memory_space<vmem>>, vector<1x32xf32>
    %8 = vector.broadcast %7 : vector<1x32xf32> to vector<8x32xf32>
    %9 = arith.addf %6, %8 : vector<8x32xf32>
    %cst_7 = arith.constant 0.000000e+00 : f32
    %10 = vector.broadcast %cst_7 : f32 to vector<8x32xf32>
    %11 = arith.maximumf %9, %10 : vector<8x32xf32>
    %12 = arith.truncf %11 : vector<8x32xf32> to vector<8x32xbf16>
    %c0_8 = arith.constant 0 : index
    %c0_9 = arith.constant 0 : index
    %13 = vector.load %arg5[%c0_8, %c0_9] : memref<32x32xbf16, #tpu.memory_space<vmem>>, vector<32x32xbf16>
    %cst_10 = arith.constant dense<0.000000e+00> : vector<8x32xf32>
    %14 = tpu.matmul %12, %13, %cst_10 {dimension_numbers = #tpu.dot_dimension_numbers<[1], [0], [0], [1], [0, 0, 1, 1], [], []>} : vector<8x32xbf16>, vector<32x32xbf16>, vector<8x32xf32> -> vector<8x32xf32>
    %c0_11 = arith.constant 0 : index
    %c0_12 = arith.constant 0 : index
    %15 = vector.load %arg6[%c0_11, %c0_12] : memref<1x32xf32, #tpu.memory_space<vmem>>, vector<1x32xf32>
    %16 = vector.broadcast %15 : vector<1x32xf32> to vector<8x32xf32>
    %17 = arith.mulf %14, %16 : vector<8x32xf32>
    %c0_13 = arith.constant 0 : index
    %c0_14 = arith.constant 0 : index
    %18 = vector.load %arg7[%c0_13, %c0_14] : memref<1x32xf32, #tpu.memory_space<vmem>>, vector<1x32xf32>
    %19 = vector.broadcast %18 : vector<1x32xf32> to vector<8x32xf32>
    %20 = arith.addf %17, %19 : vector<8x32xf32>
    %cst_15 = arith.constant 0.000000e+00 : f32
    %21 = vector.broadcast %cst_15 : f32 to vector<8x32xf32>
    %22 = arith.maximumf %20, %21 : vector<8x32xf32>
    %23 = arith.truncf %22 : vector<8x32xf32> to vector<8x32xbf16>
    %c0_16 = arith.constant 0 : index
    %c0_17 = arith.constant 0 : index
    %24 = vector.load %arg8[%c0_16, %c0_17] : memref<32x128xbf16, #tpu.memory_space<vmem>>, vector<32x128xbf16>
    %cst_18 = arith.constant dense<0.000000e+00> : vector<8x128xf32>
    %25 = tpu.matmul %23, %24, %cst_18 {dimension_numbers = #tpu.dot_dimension_numbers<[1], [0], [0], [1], [0, 0, 1, 1], [], []>} : vector<8x32xbf16>, vector<32x128xbf16>, vector<8x128xf32> -> vector<8x128xf32>
    %c0_19 = arith.constant 0 : index
    %c0_20 = arith.constant 0 : index
    %26 = vector.load %arg9[%c0_19, %c0_20] : memref<1x128xf32, #tpu.memory_space<vmem>>, vector<1x128xf32>
    %27 = vector.broadcast %26 : vector<1x128xf32> to vector<8x128xf32>
    %28 = arith.addf %25, %27 : vector<8x128xf32>
    %c0_21 = arith.constant 0 : index
    %c0_22 = arith.constant 0 : index
    %29 = vector.load %arg10[%c0_21, %c0_22] : memref<8x128xf32, #tpu.memory_space<vmem>>, vector<8x128xf32>
    tpu.vector_store %arg10[%c0_21, %c0_22], %28 {strides = array<i32>} : memref<8x128xf32, #tpu.memory_space<vmem>>, vector<8x128xf32>,
    return
  }
  func.func @transform_0(%arg0: i32) -> (i32, i32) {
    %c0_i32 = arith.constant 0 : i32
    %c0_i32_0 = arith.constant 0 : i32
    return %arg0, %c0_i32 : i32, i32
  }
  func.func @transform_1(%arg0: i32) -> (i32, i32) {
    %c0_i32 = arith.constant 0 : i32
    %c0_i32_0 = arith.constant 0 : i32
    %c0_i32_1 = arith.constant 0 : i32
    return %c0_i32, %c0_i32_0 : i32, i32
  }
  func.func @transform_2(%arg0: i32) -> (i32, i32) {
    %c0_i32 = arith.constant 0 : i32
    %c0_i32_0 = arith.constant 0 : i32
    %c0_i32_1 = arith.constant 0 : i32
    return %c0_i32, %c0_i32_0 : i32, i32
  }
  func.func @transform_3(%arg0: i32) -> (i32, i32) {
    %c0_i32 = arith.constant 0 : i32
    %c0_i32_0 = arith.constant 0 : i32
    %c0_i32_1 = arith.constant 0 : i32
    return %c0_i32, %c0_i32_0 : i32, i32
  }
  func.func @transform_4(%arg0: i32) -> (i32, i32) {
    %c0_i32 = arith.constant 0 : i32
    %c0_i32_0 = arith.constant 0 : i32
    %c0_i32_1 = arith.constant 0 : i32
    return %c0_i32, %c0_i32_0 : i32, i32
  }
  func.func @transform_5(%arg0: i32) -> (i32, i32) {
    %c0_i32 = arith.constant 0 : i32
    %c0_i32_0 = arith.constant 0 : i32
    %c0_i32_1 = arith.constant 0 : i32
    return %c0_i32, %c0_i32_0 : i32, i32
  }
  func.func @transform_6(%arg0: i32) -> (i32, i32) {
    %c0_i32 = arith.constant 0 : i32
    %c0_i32_0 = arith.constant 0 : i32
    %c0_i32_1 = arith.constant 0 : i32
    return %c0_i32, %c0_i32_0 : i32, i32
  }
  func.func @transform_7(%arg0: i32) -> (i32, i32) {
    %c0_i32 = arith.constant 0 : i32
    %c0_i32_0 = arith.constant 0 : i32
    %c0_i32_1 = arith.constant 0 : i32
    return %c0_i32, %c0_i32_0 : i32, i32
  }
  func.func @transform_8(%arg0: i32) -> (i32, i32) {
    %c0_i32 = arith.constant 0 : i32
    %c0_i32_0 = arith.constant 0 : i32
    %c0_i32_1 = arith.constant 0 : i32
    return %c0_i32, %c0_i32_0 : i32, i32
  }
  func.func @transform_9(%arg0: i32) -> (i32, i32) {
    %c0_i32 = arith.constant 0 : i32
    %c0_i32_0 = arith.constant 0 : i32
    return %arg0, %c0_i32 : i32, i32
  }
}

</mosaic_0001>

<bundles_post_ra>
// kernel: tpu_custom_call.1
= control target key start
LH: loop header
LB: loop body
LE: loop exit
PB: predicated region body
PF: predicated region fallthrough
CT: control target
= control target key end

     0   :  { %14 = vsyncpa [#allocation3], 0  ;;  %s1018_s0 = inlined_call_operand.vmem [shape: f32[16,64], index: 0, kind: input, shape index: {}]   ;;  %s1019_s1 = inlined_call_operand.vmem [shape: bf16[64,32], index: 1, kind: input, shape index: {}]   ;;  %s1020_s2 = inlined_call_operand.vmem [shape: f32[1,32], index: 2, kind: input, shape index: {}]   ;;  %s1021_s3 = inlined_call_operand.vmem [shape: f32[1,32], index: 3, kind: input, shape index: {}]   ;;  %s1022_s4 = inlined_call_operand.vmem [shape: bf16[32,32], index: 4, kind: input, shape index: {}]   ;;  %s1023_s5 = inlined_call_operand.vmem [shape: f32[1,32], index: 5, kind: input, shape index: {}]   ;;  %s1024_s6 = inlined_call_operand.vmem [shape: f32[1,32], index: 6, kind: input, shape index: {}]   ;;  %s1025_s7 = inlined_call_operand.vmem [shape: bf16[32,128], index: 7, kind: input, shape index: {}]   ;;  %s1026_s8 = inlined_call_operand.vmem [shape: f32[1,128], index: 8, kind: input, shape index: {}]   ;;  %s1027_s9 = inlined_call_operand.hbm [shape: f32[16,128], index: 9, kind: output, shape index: {}]  }
   0x1   :  { %16 = vsyncpa [#allocation3 + $0x1], 0  ;;  %s874_s30 = smov 0   ;;  %s876_s10 = smov 0  }
   0x2   :  { %s878_s11 = smov 0   ;;  %s880_s12 = smov 0  }
   0x3 LB: > { %s895_s13 = sadd.s32 4294967295, %s819_s12   ;;  %s643_s14 = sadd.s32 4294967294, %s819_s12   ;;  %s819_s12 = sphi %s880_s12, %s1033_s12   ;;  %s815_s11 = sphi %s878_s11, %s1032_s11   ;;  %s811_s10 = sphi %s876_s10, %s1031_s10   ;;  %s807_s30 = sphi %s874_s30, %s1030_s30  }
   0x4   : > { %s899_s15 = sadd.s32 1, %s819_s12   ;;  %s223_s16 = sadd.s32 1, %s815_s11 }
   0x5   : > { %s220_s17 = ssub.s32 %s819_s12, %s899_s15  ;;  %p233_p0 = scmp.ne.s32.totalorder %s815_s11, %s811_s10 }
   0x6   : > { %p221_p1 = scmp.eq.s32.totalorder %s220_s17, 0  ;;  %p234_p2 = scmp.eq.s32.totalorder %s895_s13, 1 }
   0x7   : > { %p239_p3 = scmp.ne.s32.totalorder %s811_s10, %s807_s30  ;;  %p240_p4 = scmp.eq.s32.totalorder %s643_s14, 1 }
   0x8   : > { %s910_s18 = scalar_select %p221_p1, %s815_s11, %s223_s16  }
   0x9   : > { %p912_p5 = por %p234_p2, %p233_p0  ;;  %p916_p6 = por %p240_p4, %p239_p3 }
   0xa   : > { %p646_p7 = scmp.ge.s32.totalorder %s819_s12, 1  ;;  %p289_p8 = scmp.lt.s32.totalorder %s819_s12, 3 }
   0xc   : > { %p290_p9 = pnand %p646_p7, %p289_p8 }
   0xd   : > { %v749_v0 = vld [vmem:[%s1019_s1] sm:$0xff] (!%p290_p9)   ;;  %v821_v1 = vmov (!%p290_p9), 0.0   ;;  %v750_v2 = vld [vmem:[%s1019_s1 + $0x8] sm:$0xff] (!%p290_p9)   ;;  %vm822_vm0 = vmmov (!%p290_p9), 0   ;;  %p324_p10 = scmp.lt.s32.totalorder (!%p290_p9), %s895_s13, 1  ;;  %v751_v3 = vld [vmem:[%s1019_s1 + $0x10] sm:$0xff] (!%p290_p9)  }
   0xe   : > { %293 = sbr.rel (%p290_p9) target bundleno = 698 (0x2ba), region = 56  ;;  %680 = vmatprep.subr.bf16.mxu0 (!%p290_p9), %v821_v1  ;;  %692 = vmatprep.subr.bf16.mxu1 (!%p290_p9), %v821_v1  ;;  %v752_v4 = vld [vmem:[%s1019_s1 + $0x18] sm:$0xff] (!%p290_p9)   ;;  %vm363_vm1 = vcmask (!%p290_p9), 523264   ;;  %v753_v7 = vld [vmem:[%s1022_s4] sm:$0xff] (!%p290_p9)   ;;  %v754_v8 = vld [vmem:[%s1022_s4 + $0x8] sm:$0xff] (!%p290_p9)   ;;  %vm441_vm2 = vcmask (!%p290_p9), 261120  }
   0xf   : > { %681 = vmatpush3.bf16.msra.mxu0 (!%p290_p9), %v749_v0  ;;  %688 = vmatprep.mubr.msk.bf16.mxu0 (!%p290_p9), %vm822_vm0, %v821_v1  ;;  %v654_v9 = vld [vmem:[%s1020_s2] ss:$0 sm:$0xff] (!%p290_p9)  ;;  %v756_v20 = vld [vmem:[%s1025_s7 + $0x8] sm:$0xff] (!%p290_p9)   ;;  %s321_s26 = sand.u32 (!%p290_p9), 1, %s811_s10   ;;  %s666_s14 = sshll.u32 (!%p290_p9), %s895_s13, 7 }
  0x10   : > { %682 = vmatprep.subr.bf16.mxu0 (!%p290_p9), %v821_v1  ;;  %696 = vmatprep.mubr.msk.bf16.mxu1 (!%p290_p9), %vm822_vm0, %v821_v1  ;;  %v655_v11 = vld [vmem:[%s1021_s3] ss:$0 sm:$0xff] (!%p290_p9)  ;;  %s647_s27 = sshll.u32 (!%p290_p9), %s321_s26, 3  ;;  %s976_s23 = scalar_lea.hbm (!%p290_p9), %s1027_s9, %s666_s14 }
  0x11   : > { %693 = vmatpush3.bf16.msra.mxu1 (!%p290_p9), %v753_v7  ;;  %v755_v19 = vld [vmem:[%s1025_s7] sm:$0xff] (!%p290_p9)   ;;  %s571_s24 = scalar_lea.sflag (!%p290_p9), [#allocation3], %s321_s26 }
  0x12   : > { %694 = vmatprep.subr.bf16.mxu1 (!%p290_p9), %v821_v1  ;;  %v659_v21 = vld [vmem:[%s1023_s5] ss:$0 sm:$0xff] (!%p290_p9) }
  0x13   : > { %683 = vmatpush3.bf16.msra.mxu0 (!%p290_p9), %v750_v2  ;;  %v660_v23 = vld [vmem:[%s1024_s6] ss:$0 sm:$0xff] (!%p290_p9) }
  0x14   : > { %684 = vmatprep.subr.bf16.mxu0 (!%p290_p9), %v821_v1  ;;  %v661_v31 = vld [vmem:[%s1026_s8] ss:$0 sm:$0xff] (!%p290_p9) }
  0x15   : > { %s325_s25 = scalar_select %p324_p10, %s895_s13, 1  ;;  %695 = vmatpush3.bf16.msra.mxu1 %v754_v8 }
  0x16   : > { %700 = vmatprep.subr.bf16.mxu1 %v821_v1 }
  0x17   : > { %s648_s28 = sshll.u32 %s325_s25, 3  ;;  %685 = vmatpush3.bf16.msra.mxu0 %v751_v3  ;;  %s823_s25 = smov [#allocation2]  }
  0x18   : > { %s327_s16 = scalar_lea.vmem %s1018_s0, %s648_s28  ;;  %686 = vmatprep.subr.bf16.mxu0 %v821_v1 }
  0x19   : > { %v329_v5 = vld [vmem:[%s327_s16] sm:$0xff]  ;;  %s323_s16 = scalar_lea.vmem [#allocation2], %s647_s27  ;;  %s761_s27 = sshll.u32 %s823_s25, 4  ;;  %s762_s27 = int_to_ptr.vmem [resolvable:$false] %s761_s27 }
  0x1a   : > { %v330_v6 = vpack.c.bf16 %v329_v5, %v329_v5  ;;  %s584_s17 = sshll.u32 %s323_s16, 4  ;;  %s763_s28 = scalar_lea.vmem %s762_s27, 256  ;;  %s978_s17 = int_to_ptr.vmem [resolvable:$true] %s584_s17 }
  0x1b   : > { %687 = vmatpush3.bf16.msra.mxu0 %v752_v4  ;;  %s757_s13 = scalar_lea.vmem %s978_s17, 128  ;;  %p764_p0 = scmp.lt.s32.totalorder %s978_s17, %s762_s27 }
  0x1c   : > { %p758_p11 = scmp.ne.s32.totalorder %s978_s17, %s757_s13  ;;  %p765_p1 = scmp.lt.s32.totalorder %s763_s28, %s757_s13 }
  0x1e   : > { %689 = vmatmul.mubr.msk.bf16.vlgmr.msra.gmra.mrb[0].mxu0 %vm363_vm1, %v330_v6  ;;  %p759_p12 = pnand %p758_p11, %p912_p5  ;;  %p766_p2 = por %p765_p1, %p764_p0 }
  0x20   : > { %p760_p13 = pneg %p759_p12 }
  0x22   : > { %p767_p3 = pnand %p766_p2, %p760_p13 }
  0xf1   : > { %v401_v10 = vpop.f32.mrb[0].mxu0 }
  0xf2   : > { %v414_v12 = vmul.f32 %v654_v9, %v401_v10  ;;  %v690_v13 = vpop.f32.mrb[1].mxu0 }
  0xf3   : > { %v404_v14 = vpop.f32.mrb[2].mxu0 }
  0xf4   : > { %v422_v15 = vadd.f32 %v655_v11, %v414_v12  ;;  %v691_v16 = vpop.f32.mrb[3].mxu0 }
  0xf6   : > { %v423_v17 = vmax.f32 %v422_v15, 0.0 }
  0xf8   : > { %v424_v18 = vpack.c.bf16 %v423_v17, %v423_v17 }
  0xfa   : > { %697 = vmatmul.mubr.msk.bf16.vlgmr.msra.gmra.mrb[0].mxu1 %vm441_vm2, %v424_v18 }
  0xfb   : > { %704 = vmatprep.mubr.msk.bf16.mxu1 %vm822_vm0, %v821_v1  ;;  %701 = vmatpush3.bf16.msra.mxu1 %v755_v19 }
  0xfc   : > { %702 = vmatprep.subr.bf16.mxu1 %v821_v1 }
  0xff   : > { %703 = vmatpush3.bf16.msra.mxu1 %v756_v20 }
 0x1cd   : > { %v479_v22 = vpop.f32.mrb[0].mxu1 }
 0x1ce   : > { %v492_v24 = vmul.f32 %v659_v21, %v479_v22  ;;  %v698_v25 = vpop.f32.mrb[1].mxu1 }
 0x1cf   : > { %v482_v26 = vpop.f32.mrb[2].mxu1 }
 0x1d0   : > { %v500_v27 = vadd.f32 %v660_v23, %v492_v24  ;;  %v699_v28 = vpop.f32.mrb[3].mxu1 }
 0x1d2   : > { %v501_v29 = vmax.f32 %v500_v27, 0.0 }
 0x1d4   : > { %v502_v30 = vpack.c.bf16 %v501_v29, %v501_v29 }
 0x1d6   : > { %705 = vmatmul.mubr.msk.bf16.vlgmr.msra.gmra.mrb[4].mxu1 %vm441_vm2, %v502_v30 }
 0x2a9   : > { %v563_v32 = vpop.f32.mrb[4].mxu1 }
 0x2aa   : > { %v564_v33 = vadd.f32 %v661_v31, %v563_v32  ;;  %v706_v34 = vpop.f32.mrb[5].mxu1 }
 0x2ab   : > { %v566_v35 = vpop.f32.mrb[6].mxu1 }
 0x2ac   : > { %569 = vst [vmem:[%s323_s16] sm:$0xff] %v564_v33  ;;  %v707_v36 = vpop.f32.mrb[7].mxu1 }
 0x2ad   : > { %770 = shalt.err (!%p767_p3)
}
 0x2ae   : > { %s771_s26 = scalar_lea.hbm %s976_s23, 128  ;;  %s775_s16 = scalar_lea.hbm %s1027_s9, 256 }
 0x2af   : > { %p772_p4 = scmp.ne.s32.totalorder %s976_s23, %s771_s26  ;;  %p776_p9 = scmp.lt.u32.totalorder %s976_s23, %s1027_s9 }
 0x2b0   : > { %p777_p10 = scmp.lt.u32.totalorder %s775_s16, %s771_s26  ;;  %p779_p12 = scmp.lt.u32.totalorder %s771_s26, %s976_s23 }
 0x2b1   : > { %p773_p7 = pnand %p772_p4, %p912_p5 }
 0x2b2   : > { %p778_p11 = por %p777_p10, %p776_p9 }
 0x2b3   : > { %p774_p8 = pneg %p773_p7 }
 0x2b4   : > { %p780_p13 = por %p779_p12, %p778_p11 }
 0x2b6   : > { %p781_p0 = pnand %p780_p13, %p774_p8 }
 0x2b8   : > { %784 = shalt.err (!%p781_p0)
}
 0x2b9   : > { %708 = dma.vmem_to_hbm [thread:$0]  (%p912_p5), %s978_s17, 128, %s976_s23, %s571_s24  }
 0x2ba PF: > { %p714_p1 = scmp.ge.s32.totalorder %s819_s12, 2  ;;  %s596_s13 = sand.u32 1, %s807_s30  }
 0x2bb   : > { %s597_s25 = scalar_lea.sflag [#allocation3], %s596_s13 }
 0x2bc   : > { %p711_p2 = pnand %p714_p1, %p916_p6 }
 0x2be   : > { %802 = dma.done.wait (!%p711_p2), %s597_s25, 128  }
 0x2bf   : > { %804 = vsyncadd (!%p711_p2), %s597_s25, 4294967168  ;;  %p19_p3 = scmp.ge.s32.totalorder %s899_s15, 4   ;;  %s1030_s30 = smov %s811_s10 }
 0x2c0   : > { %s1031_s10 = smov %s815_s11  ;;  %s1032_s11 = smov %s910_s18 }
 0x2c1   : > { %s1033_s12 = smov %s899_s15  ;;  %21 = sbr.rel (!%p19_p3) target bundleno = 3 (0x3), region = 91 }
 0x2c8   :  { %602 = vsyncpa [#allocation3], 1 }
 0x2c9   :  { %604 = vsyncpa [#allocation3 + $0x1], 1 }

</bundles_post_ra>
